<compile_context>
chip_gen: v7x
topology: tpu7x:2x2x1
jax: 0.10.0
libtpu: 0.0.40
codegen_flags: <defaults>
</compile_context>

<pallas_src>
import functools

import jax
import jax.numpy as jnp
from jax import lax
from jax.experimental import pallas as pl
from jax.experimental.pallas import tpu as pltpu

embedding_dim = 64
graph = {0: [1, 2], 1: [0, 2, 3], 2: [0, 1, 4], 3: [1, 4, 5], 4: [2, 3, 5], 5: [3, 4]}
num_nodes = len(graph)

_LANES = 128


def node2vec_kernel(src_ref, dst_ref, emb_t_ref, out_ref, *, rows, n_pad):
    """One grid step: tile_m = rows * 128 pairs.

    src_ref / dst_ref : VMEM int32[1, rows, 128]   (lane-dense index blocks)
    emb_t_ref         : VMEM f32[D, n_pad]          (resident, transposed table)
    out_ref           : VMEM f32[1, rows, 128]      (lane-dense output block)
    """
    emb_t = emb_t_ref[...]                                        # (D, n_pad)
    iota_n = lax.broadcasted_iota(jnp.int32, (n_pad, _LANES), 0)  # hoisted

    # Static unroll over the sublane rows of this tile (rows is a small int).
    for r in range(rows):
        src_row = src_ref[0, r, :]                                # (128,) int32
        dst_row = dst_ref[0, r, :]
        # One-hot selectors: (n_pad, 128).  OOB / padded indices -> all-zero
        # column -> zero output; no memory hazard.
        onehot_s = (iota_n == src_row[None, :]).astype(jnp.float32)
        onehot_d = (iota_n == dst_row[None, :]).astype(jnp.float32)
        # MXU gathers: (D, n_pad) @ (n_pad, 128) -> (D, 128).
        s_emb = jnp.dot(emb_t, onehot_s, preferred_element_type=jnp.float32)
        d_emb = jnp.dot(emb_t, onehot_d, preferred_element_type=jnp.float32)
        # Elementwise product (VPU) + sublane reduce over D (XLU) -> (128,).
        out_ref[0, r, :] = jnp.sum(s_emb * d_emb, axis=0)


def node2vec_forward(node_pairs, embeddings, *, tile_m=256):
    """node_pairs: [P, 2] int, embeddings: [N, D] float32 -> [P] float32."""
    assert tile_m % _LANES == 0, "tile_m must be a multiple of 128"
    P = node_pairs.shape[0]
    N, D = embeddings.shape
    rows = tile_m // _LANES
    n_pad = max(8, ((N + 7) // 8) * 8)          # sublane-align the table rows

    src = node_pairs[:, 0].astype(jnp.int32)
    dst = node_pairs[:, 1].astype(jnp.int32)

    num_tiles = pl.cdiv(P, tile_m)
    p_pad = num_tiles * tile_m
    if p_pad != P:
        # Padded pairs select node 0; their results are dropped by the final slice.
        pad = jnp.zeros((p_pad - P,), jnp.int32)
        src = jnp.concatenate([src, pad])
        dst = jnp.concatenate([dst, pad])

    # Lane-dense index layout: pair p lives at [p // (rows*128), (p//128) % rows, p % 128].
    src3 = src.reshape(num_tiles, rows, _LANES)
    dst3 = dst.reshape(num_tiles, rows, _LANES)

    # Transposed, zero-padded table: (D, n_pad).  Padded columns are zero.
    emb_t = jnp.pad(embeddings.T.astype(jnp.float32), ((0, 0), (0, n_pad - N)))

    grid_spec = pltpu.PrefetchScalarGridSpec(
        num_scalar_prefetch=0,
        grid=(num_tiles,),
        in_specs=[
            pl.BlockSpec((1, rows, _LANES), lambda i: (i, 0, 0)),   # src indices
            pl.BlockSpec((1, rows, _LANES), lambda i: (i, 0, 0)),   # dst indices
            pl.BlockSpec((D, n_pad), lambda i: (0, 0)),             # resident table
        ],
        out_specs=pl.BlockSpec((1, rows, _LANES), lambda i: (i, 0, 0)),
    )

    out3 = pl.pallas_call(
        functools.partial(node2vec_kernel, rows=rows, n_pad=n_pad),
        out_shape=jax.ShapeDtypeStruct((num_tiles, rows, _LANES), jnp.float32),
        grid_spec=grid_spec,
        compiler_params=pltpu.CompilerParams(
            dimension_semantics=("parallel",),
            vmem_limit_bytes=32 * 1024 * 1024,
        ),
        cost_estimate=pl.CostEstimate(
            flops=4 * p_pad * n_pad * D + 2 * p_pad * D,
            transcendentals=0,
            # table DMA'd once (resident) + index blocks + output
            bytes_accessed=D * n_pad * 4 + 2 * p_pad * 4 + p_pad * 4,
        ),
    )(src3, dst3, emb_t)

    return out3.reshape(-1)[:P]


if __name__ == "__main__":
    key = jax.random.PRNGKey(0)
    k_emb, k_pairs = jax.random.split(key)

    # nn.Embedding default init: N(0, 1)
    embeddings = jax.random.normal(k_emb, (num_nodes, embedding_dim), dtype=jnp.float32)

    # Deterministic batch of node pairs drawn from the graph edges.
    P = 2048                                   # 8 grid tiles of tile_m = 256 pairs
    edges = [(u, v) for u, nbrs in graph.items() for v in nbrs]
    edges_arr = jnp.asarray(edges, dtype=jnp.int32)          # [E, 2]
    idx = jax.random.randint(k_pairs, (P,), 0, edges_arr.shape[0])
    node_pairs = edges_arr[idx]                              # [P, 2] int32

    out = node2vec_forward(node_pairs, embeddings)
    out = jax.block_until_ready(out)

    # Reference check in plain JAX.
    ref = jnp.sum(embeddings[node_pairs[:, 0]] * embeddings[node_pairs[:, 1]], axis=1)
    assert out.shape == (P,)
    assert jnp.allclose(out, ref, atol=1e-5, rtol=1e-5)

    print("KERNEL_OK")
</pallas_src>

<mosaic_0001>
module attributes {stable_mosaic.version = 11 : i64} {
  func.func @node2vec_kernel(%arg0: i32, %arg1: memref<1x2x128xi32, #tpu.memory_space<vmem>>, %arg2: memref<1x2x128xi32, #tpu.memory_space<vmem>>, %arg3: memref<64x8xf32, #tpu.memory_space<vmem>>, %arg4: memref<1x2x128xf32, #tpu.memory_space<vmem>>) attributes {dimension_semantics = [#tpu.dimension_semantics<parallel>], iteration_bounds = array<i64: 8>, scalar_prefetch = 0 : i64, scratch_operands = 0 : i64, tpu.core_type = #tpu.core_type<tc>, window_params = [{transform_indices = @transform_0, window_bounds = array<i64: 1, 2, 128>}, {transform_indices = @transform_1, window_bounds = array<i64: 1, 2, 128>}, {pipeline_mode = #tpu.pipeline_mode<synchronous>, transform_indices = @transform_2, window_bounds = array<i64: 64, 8>}, {transform_indices = @transform_3, window_bounds = array<i64: 1, 2, 128>}]} {
    %c0 = arith.constant 0 : index
    %c0_0 = arith.constant 0 : index
    %0 = vector.load %arg3[%c0, %c0_0] : memref<64x8xf32, #tpu.memory_space<vmem>>, vector<64x8xf32>
    %1 = tpu.iota {dimensions = array<i32: 0>} : vector<8x128xi32>
    %c0_1 = arith.constant 0 : index
    %c0_2 = arith.constant 0 : index
    %c0_3 = arith.constant 0 : index
    %2 = vector.load %arg1[%c0_1, %c0_2, %c0_3] : memref<1x2x128xi32, #tpu.memory_space<vmem>>, vector<1x1x128xi32>
    %3 = vector.shape_cast %2 : vector<1x1x128xi32> to vector<128xi32>
    %c0_4 = arith.constant 0 : index
    %c0_5 = arith.constant 0 : index
    %c0_6 = arith.constant 0 : index
    %4 = vector.load %arg2[%c0_4, %c0_5, %c0_6] : memref<1x2x128xi32, #tpu.memory_space<vmem>>, vector<1x1x128xi32>
    %5 = vector.shape_cast %4 : vector<1x1x128xi32> to vector<128xi32>
    %6 = vector.shape_cast %3 : vector<128xi32> to vector<1x128xi32>
    %7 = vector.broadcast %6 : vector<1x128xi32> to vector<8x128xi32>
    %8 = arith.cmpi eq, %1, %7 : vector<8x128xi32>
    %9 = arith.extui %8 : vector<8x128xi1> to vector<8x128xi32>
    %10 = arith.sitofp %9 : vector<8x128xi32> to vector<8x128xf32>
    %11 = vector.shape_cast %5 : vector<128xi32> to vector<1x128xi32>
    %12 = vector.broadcast %11 : vector<1x128xi32> to vector<8x128xi32>
    %13 = arith.cmpi eq, %1, %12 : vector<8x128xi32>
    %14 = arith.extui %13 : vector<8x128xi1> to vector<8x128xi32>
    %15 = arith.sitofp %14 : vector<8x128xi32> to vector<8x128xf32>
    %cst = arith.constant dense<0.000000e+00> : vector<64x128xf32>
    %16 = tpu.matmul %0, %10, %cst {dimension_numbers = #tpu.dot_dimension_numbers<[1], [0], [0], [1], [0, 0, 1, 1], [], []>} : vector<64x8xf32>, vector<8x128xf32>, vector<64x128xf32> -> vector<64x128xf32>
    %cst_7 = arith.constant dense<0.000000e+00> : vector<64x128xf32>
    %17 = tpu.matmul %0, %15, %cst_7 {dimension_numbers = #tpu.dot_dimension_numbers<[1], [0], [0], [1], [0, 0, 1, 1], [], []>} : vector<64x8xf32>, vector<8x128xf32>, vector<64x128xf32> -> vector<64x128xf32>
    %18 = arith.mulf %16, %17 : vector<64x128xf32>
    %cst_8 = arith.constant dense<0.000000e+00> : vector<128xf32>
    %19 = vector.multi_reduction <add>, %18, %cst_8 [0] : vector<64x128xf32> to vector<128xf32>
    %c0_9 = arith.constant 0 : index
    %c0_10 = arith.constant 0 : index
    %c0_11 = arith.constant 0 : index
    %20 = vector.load %arg4[%c0_9, %c0_10, %c0_11] : memref<1x2x128xf32, #tpu.memory_space<vmem>>, vector<1x1x128xf32>
    %21 = vector.shape_cast %20 : vector<1x1x128xf32> to vector<128xf32>
    %22 = vector.shape_cast %19 : vector<128xf32> to vector<1x1x128xf32>
    tpu.vector_store %arg4[%c0_9, %c0_10, %c0_11], %22 {strides = array<i32>} : memref<1x2x128xf32, #tpu.memory_space<vmem>>, vector<1x1x128xf32>,
    %c0_12 = arith.constant 0 : index
    %c1 = arith.constant 1 : index
    %c0_13 = arith.constant 0 : index
    %23 = vector.load %arg1[%c0_12, %c1, %c0_13] : memref<1x2x128xi32, #tpu.memory_space<vmem>>, vector<1x1x128xi32>
    %24 = vector.shape_cast %23 : vector<1x1x128xi32> to vector<128xi32>
    %c0_14 = arith.constant 0 : index
    %c1_15 = arith.constant 1 : index
    %c0_16 = arith.constant 0 : index
    %25 = vector.load %arg2[%c0_14, %c1_15, %c0_16] : memref<1x2x128xi32, #tpu.memory_space<vmem>>, vector<1x1x128xi32>
    %26 = vector.shape_cast %25 : vector<1x1x128xi32> to vector<128xi32>
    %27 = vector.shape_cast %24 : vector<128xi32> to vector<1x128xi32>
    %28 = vector.broadcast %27 : vector<1x128xi32> to vector<8x128xi32>
    %29 = arith.cmpi eq, %1, %28 : vector<8x128xi32>
    %30 = arith.extui %29 : vector<8x128xi1> to vector<8x128xi32>
    %31 = arith.sitofp %30 : vector<8x128xi32> to vector<8x128xf32>
    %32 = vector.shape_cast %26 : vector<128xi32> to vector<1x128xi32>
    %33 = vector.broadcast %32 : vector<1x128xi32> to vector<8x128xi32>
    %34 = arith.cmpi eq, %1, %33 : vector<8x128xi32>
    %35 = arith.extui %34 : vector<8x128xi1> to vector<8x128xi32>
    %36 = arith.sitofp %35 : vector<8x128xi32> to vector<8x128xf32>
    %cst_17 = arith.constant dense<0.000000e+00> : vector<64x128xf32>
    %37 = tpu.matmul %0, %31, %cst_17 {dimension_numbers = #tpu.dot_dimension_numbers<[1], [0], [0], [1], [0, 0, 1, 1], [], []>} : vector<64x8xf32>, vector<8x128xf32>, vector<64x128xf32> -> vector<64x128xf32>
    %cst_18 = arith.constant dense<0.000000e+00> : vector<64x128xf32>
    %38 = tpu.matmul %0, %36, %cst_18 {dimension_numbers = #tpu.dot_dimension_numbers<[1], [0], [0], [1], [0, 0, 1, 1], [], []>} : vector<64x8xf32>, vector<8x128xf32>, vector<64x128xf32> -> vector<64x128xf32>
    %39 = arith.mulf %37, %38 : vector<64x128xf32>
    %cst_19 = arith.constant dense<0.000000e+00> : vector<128xf32>
    %40 = vector.multi_reduction <add>, %39, %cst_19 [0] : vector<64x128xf32> to vector<128xf32>
    %c0_20 = arith.constant 0 : index
    %c1_21 = arith.constant 1 : index
    %c0_22 = arith.constant 0 : index
    %41 = vector.load %arg4[%c0_20, %c1_21, %c0_22] : memref<1x2x128xf32, #tpu.memory_space<vmem>>, vector<1x1x128xf32>
    %42 = vector.shape_cast %41 : vector<1x1x128xf32> to vector<128xf32>
    %43 = vector.shape_cast %40 : vector<128xf32> to vector<1x1x128xf32>
    tpu.vector_store %arg4[%c0_20, %c1_21, %c0_22], %43 {strides = array<i32>} : memref<1x2x128xf32, #tpu.memory_space<vmem>>, vector<1x1x128xf32>,
    return
  }
  func.func @transform_0(%arg0: i32) -> (i32, i32, i32) {
    %c0_i32 = arith.constant 0 : i32
    %c0_i32_0 = arith.constant 0 : i32
    %c0_i32_1 = arith.constant 0 : i32
    return %arg0, %c0_i32, %c0_i32_0 : i32, i32, i32
  }
  func.func @transform_1(%arg0: i32) -> (i32, i32, i32) {
    %c0_i32 = arith.constant 0 : i32
    %c0_i32_0 = arith.constant 0 : i32
    %c0_i32_1 = arith.constant 0 : i32
    return %arg0, %c0_i32, %c0_i32_0 : i32, i32, i32
  }
  func.func @transform_2(%arg0: i32) -> (i32, i32) {
    %c0_i32 = arith.constant 0 : i32
    %c0_i32_0 = arith.constant 0 : i32
    %c0_i32_1 = arith.constant 0 : i32
    return %c0_i32, %c0_i32_0 : i32, i32
  }
  func.func @transform_3(%arg0: i32) -> (i32, i32, i32) {
    %c0_i32 = arith.constant 0 : i32
    %c0_i32_0 = arith.constant 0 : i32
    %c0_i32_1 = arith.constant 0 : i32
    return %arg0, %c0_i32, %c0_i32_0 : i32, i32, i32
  }
}

</mosaic_0001>

<bundles_post_ra>
// kernel: tpu_custom_call.1
= control target key start
LH: loop header
LB: loop body
LE: loop exit
PB: predicated region body
PF: predicated region fallthrough
CT: control target
= control target key end

     0   :  { %8 = vsyncpa [#allocation3], 0  ;;  %s1235_s0 = inlined_call_operand.vmem [shape: s32[8,2,128], index: 0, kind: input, shape index: {}]   ;;  %s1236_s1 = inlined_call_operand.vmem [shape: s32[8,2,128], index: 1, kind: input, shape index: {}]   ;;  %s1237_s2 = inlined_call_operand.vmem [shape: f32[64,8], index: 2, kind: input, shape index: {}]   ;;  %s1238_s3 = inlined_call_operand.hbm [shape: f32[8,2,128], index: 3, kind: output, shape index: {}]  }
   0x1   :  { %10 = vsyncpa [#allocation3 + $0x1], 0  ;;  %s1072_s12 = smov 0   ;;  %s1074_s13 = smov 0  }
   0x2   :  { %s1076_s14 = smov 0   ;;  %s1078_s15 = smov 0  }
   0x3 LB: > { %s1093_s16 = sadd.s32 4294967295, %s1048_s15   ;;  %s799_s17 = sadd.s32 4294967294, %s1048_s15   ;;  %s1048_s15 = sphi %s1078_s15, %s1244_s15   ;;  %s1044_s14 = sphi %s1076_s14, %s1243_s14   ;;  %s1040_s13 = sphi %s1074_s13, %s1242_s13   ;;  %s1036_s12 = sphi %s1072_s12, %s1241_s12  }
   0x4   : > { %s1097_s18 = sadd.s32 1, %s1048_s15   ;;  %s96_s19 = sadd.s32 1, %s1044_s14 }
   0x5   : > { %s93_s20 = ssub.s32 %s1048_s15, %s1097_s18  ;;  %p106_p0 = scmp.ne.s32.totalorder %s1044_s14, %s1040_s13 }
   0x6   : > { %p94_p1 = scmp.eq.s32.totalorder %s93_s20, 0  ;;  %p107_p2 = scmp.eq.s32.totalorder %s1093_s16, 7 }
   0x7   : > { %p112_p3 = scmp.ne.s32.totalorder %s1040_s13, %s1036_s12  ;;  %p113_p4 = scmp.eq.s32.totalorder %s799_s17, 7 }
   0x8   : > { %s1108_s21 = scalar_select %p94_p1, %s1044_s14, %s96_s19  }
   0x9   : > { %p1110_p5 = por %p107_p2, %p106_p0  ;;  %p1114_p6 = por %p113_p4, %p112_p3 }
   0xa   : > { %p802_p7 = scmp.ge.s32.totalorder %s1048_s15, 1  ;;  %p148_p8 = scmp.lt.s32.totalorder %s1048_s15, 9 }
   0xc   : > { %p149_p9 = pnand %p802_p7, %p148_p8 }
   0xd   : > { %p175_p10 = scmp.lt.s32.totalorder (!%p149_p9), %s1093_s16, 7  ;;  %v191_v0 = vlaneseq (!%p149_p9)  ;;  %v183_v1 = vld [vmem:[%s1237_s2] sm:$0xff] (!%p149_p9)  ;;  %vm209_vm0 = vcmask (!%p149_p9), 64512   ;;  %v184_v7 = vld [vmem:[%s1237_s2 + $0x8] sm:$0xff] (!%p149_p9)  ;;  %v1050_v8 = vmov (!%p149_p9), 1.0   ;;  %v185_v9 = vld [vmem:[%s1237_s2 + $0x10] sm:$0xff] (!%p149_p9) }
   0xe   : > { %152 = sbr.rel (%p149_p9) target bundleno = 303 (0x12f), region = 32  ;;  %892 = vmatprep.mubr.msk.f32.mxu0 (!%p149_p9), %vm209_vm0, %v183_v1  ;;  %906 = vmatprep.mubr.msk.f32.mxu1 (!%p149_p9), %vm209_vm0, %v183_v1  ;;  %v186_v10 = vld [vmem:[%s1237_s2 + $0x18] sm:$0xff] (!%p149_p9)  ;;  %v187_v11 = vld [vmem:[%s1237_s2 + $0x20] sm:$0xff] (!%p149_p9)  ;;  %v188_v12 = vld [vmem:[%s1237_s2 + $0x28] sm:$0xff] (!%p149_p9) }
   0xf   : > { %v192_v2 = vshrl.u32 (!%p149_p9), %v191_v0, 7  ;;  %v189_v13 = vld [vmem:[%s1237_s2 + $0x30] sm:$0xff] (!%p149_p9)  ;;  %v190_v14 = vld [vmem:[%s1237_s2 + $0x38] sm:$0xff] (!%p149_p9) }
  0x15   : > { %s176_s26 = scalar_select %p175_p10, %s1093_s16, 7 }
  0x17   : > { %s804_s27 = sshll.u32 %s176_s26, 1 }
  0x18   : > { %s178_s30 = scalar_lea.vmem %s1235_s0, %s804_s27  ;;  %s182_s6 = scalar_lea.vmem %s1236_s1, %s804_s27 }
  0x19   : > { %v806_v3 = vld [vmem:[%s178_s30] ss:$0 sm:$0xff]  ;;  %v828_v4 = vld [vmem:[%s178_s30 + $0x1] ss:$0 sm:$0xff]  ;;  %s172_s30 = sand.u32 1, %s1040_s13  }
  0x1a   : > { %v808_v5 = vld [vmem:[%s182_s6] ss:$0 sm:$0xff]  ;;  %vm199_vm1 = vcmp.eq.s32.totalorder %v192_v2, %v806_v3  ;;  %v830_v6 = vld [vmem:[%s182_s6 + $0x1] ss:$0 sm:$0xff]  ;;  %vm472_vm3 = vcmp.eq.s32.totalorder %v192_v2, %v828_v4  ;;  %s803_s4 = sshll.u32 %s172_s30, 1  ;;  %s851_s6 = sshll.u32 %s1093_s16, 5 }
  0x1b   : > { %vm206_vm2 = vcmp.eq.s32.totalorder %v192_v2, %v808_v5  ;;  %890 = vmatprep.subr.msk.mxu0 %vm199_vm1, %v1050_v8  ;;  %vm479_vm4 = vcmp.eq.s32.totalorder %v192_v2, %v830_v6  ;;  %s174_s5 = scalar_lea.vmem [#allocation2], %s803_s4  ;;  %s1191_s10 = scalar_lea.hbm %s1238_s3, %s851_s6 }
  0x1c   : > { %904 = vmatprep.subr.msk.mxu1 %vm206_vm2, %v1050_v8  ;;  %891 = vmatpush3.msk.msra.mxu0 %vm199_vm1, %v1050_v8  ;;  %s728_s7 = sshll.u32 %s174_s5, 4  ;;  %s715_s11 = scalar_lea.sflag [#allocation3], %s172_s30  ;;  %s1193_s7 = int_to_ptr.vmem [resolvable:$true] %s728_s7 }
  0x1d   : > { %905 = vmatpush3.msk.msra.mxu1 %vm206_vm2, %v1050_v8  ;;  %893 = vmatmul.mubr.msk.f32.vlgmr.msra.gmra.mrb[0].mxu0 %vm209_vm0, %v184_v7  ;;  %s986_s17 = scalar_lea.vmem %s1193_s7, 32  ;;  %s1051_s16 = smov [#allocation2]  }
  0x1e   : > { %907 = vmatmul.mubr.msk.f32.vlgmr.msra.gmra.mrb[0].mxu1 %vm209_vm0, %v184_v7  ;;  %918 = vmatprep.subr.msk.mxu0 %vm472_vm3, %v1050_v8  ;;  %p987_p11 = scmp.ne.s32.totalorder %s1193_s7, %s986_s17  ;;  %s990_s19 = sshll.u32 %s1051_s16, 4  ;;  %s991_s19 = int_to_ptr.vmem [resolvable:$false] %s990_s19 }
  0x1f   : > { %932 = vmatprep.subr.msk.mxu1 %vm479_vm4, %v1050_v8  ;;  %919 = vmatpush3.msk.msra.mxu0 %vm472_vm3, %v1050_v8  ;;  %s992_s20 = scalar_lea.vmem %s991_s19, 64  ;;  %p993_p0 = scmp.lt.s32.totalorder %s1193_s7, %s991_s19 }
  0x20   : > { %933 = vmatpush3.msk.msra.mxu1 %vm479_vm4, %v1050_v8  ;;  %895 = vmatprep.mubr.msk.f32.mxu0 %vm209_vm0, %v185_v9  ;;  %p988_p12 = pnand %p987_p11, %p1110_p5  ;;  %p994_p1 = scmp.lt.s32.totalorder %s992_s20, %s986_s17 }
  0x21   : > { %909 = vmatprep.mubr.msk.f32.mxu1 %vm209_vm0, %v185_v9  ;;  %896 = vmatmul.mubr.msk.f32.gmra.mrb[2].mxu0 %vm209_vm0, %v186_v10 }
  0x22   : > { %910 = vmatmul.mubr.msk.f32.gmra.mrb[2].mxu1 %vm209_vm0, %v186_v10  ;;  %898 = vmatprep.mubr.msk.f32.mxu0 %vm209_vm0, %v187_v11  ;;  %p989_p13 = pneg %p988_p12  ;;  %p995_p2 = por %p994_p1, %p993_p0 }
  0x23   : > { %912 = vmatprep.mubr.msk.f32.mxu1 %vm209_vm0, %v187_v11 }
  0x24   : > { %p996_p3 = pnand %p995_p2, %p989_p13 }
  0x25   : > { %899 = vmatmul.mubr.msk.f32.gmra.mrb[4].mxu0 %vm209_vm0, %v188_v12 }
  0x26   : > { %913 = vmatmul.mubr.msk.f32.gmra.mrb[4].mxu1 %vm209_vm0, %v188_v12  ;;  %901 = vmatprep.mubr.msk.f32.mxu0 %vm209_vm0, %v189_v13 }
  0x27   : > { %915 = vmatprep.mubr.msk.f32.mxu1 %vm209_vm0, %v189_v13 }
  0x29   : > { %902 = vmatmul.mubr.msk.f32.gmra.mrb[6].mxu0 %vm209_vm0, %v190_v14 }
  0x2a   : > { %916 = vmatmul.mubr.msk.f32.gmra.mrb[6].mxu1 %vm209_vm0, %v190_v14  ;;  %920 = vmatprep.mubr.msk.f32.mxu0 %vm209_vm0, %v183_v1 }
  0x2b   : > { %934 = vmatprep.mubr.msk.f32.mxu1 %vm209_vm0, %v183_v1 }
  0x2d   : > { %921 = vmatmul.mubr.msk.f32.vlgmr.msra.gmra.mrb[8].mxu0 %vm209_vm0, %v184_v7 }
  0x2e   : > { %935 = vmatmul.mubr.msk.f32.vlgmr.msra.gmra.mrb[8].mxu1 %vm209_vm0, %v184_v7  ;;  %923 = vmatprep.mubr.msk.f32.mxu0 %vm209_vm0, %v185_v9 }
  0x2f   : > { %937 = vmatprep.mubr.msk.f32.mxu1 %vm209_vm0, %v185_v9 }
  0x31   : > { %924 = vmatmul.mubr.msk.f32.gmra.mrb[10].mxu0 %vm209_vm0, %v186_v10 }
  0x32   : > { %938 = vmatmul.mubr.msk.f32.gmra.mrb[10].mxu1 %vm209_vm0, %v186_v10  ;;  %926 = vmatprep.mubr.msk.f32.mxu0 %vm209_vm0, %v187_v11 }
  0x33   : > { %940 = vmatprep.mubr.msk.f32.mxu1 %vm209_vm0, %v187_v11 }
  0x35   : > { %927 = vmatmul.mubr.msk.f32.gmra.mrb[12].mxu0 %vm209_vm0, %v188_v12 }
  0x36   : > { %941 = vmatmul.mubr.msk.f32.gmra.mrb[12].mxu1 %vm209_vm0, %v188_v12  ;;  %929 = vmatprep.mubr.msk.f32.mxu0 %vm209_vm0, %v189_v13 }
  0x37   : > { %943 = vmatprep.mubr.msk.f32.mxu1 %vm209_vm0, %v189_v13 }
  0x39   : > { %930 = vmatmul.mubr.msk.f32.gmra.mrb[14].mxu0 %vm209_vm0, %v190_v14 }
  0x3a   : > { %944 = vmatmul.mubr.msk.f32.gmra.mrb[14].mxu1 %vm209_vm0, %v190_v14 }
  0xf0   : > { %v894_v15 = vpop.f32.mrb[0].mxu0 }
  0xf1   : > { %v908_v16 = vpop.f32.mrb[0].mxu1  ;;  %v300_v18 = vpop.f32.mrb[1].mxu0 }
  0xf2   : > { %v445_v17 = vmul.f32 %v908_v16, %v894_v15  ;;  %v405_v19 = vpop.f32.mrb[1].mxu1 }
  0xf3   : > { %v444_v20 = vmul.f32 %v405_v19, %v300_v18 }
  0xf4   : > { %v897_v22 = vpop.f32.mrb[2].mxu0 }
  0xf5   : > { %v452_v21 = vadd.f32 %v445_v17, %v444_v20  ;;  %v911_v23 = vpop.f32.mrb[2].mxu1  ;;  %v310_v25 = vpop.f32.mrb[3].mxu0 }
  0xf6   : > { %v447_v24 = vmul.f32 %v911_v23, %v897_v22  ;;  %v415_v26 = vpop.f32.mrb[3].mxu1 }
  0xf7   : > { %v446_v27 = vmul.f32 %v415_v26, %v310_v25 }
  0xf8   : > { %v900_v29 = vpop.f32.mrb[4].mxu0 }
  0xf9   : > { %v453_v28 = vadd.f32 %v452_v21, %v446_v27  ;;  %v914_v30 = vpop.f32.mrb[4].mxu1  ;;  %v320_v32 = vpop.f32.mrb[5].mxu0 }
  0xfa   : > { %v449_v31 = vmul.f32 %v914_v30, %v900_v29  ;;  %v425_v33 = vpop.f32.mrb[5].mxu1 }
  0xfb   : > { %v448_v34 = vmul.f32 %v425_v33, %v320_v32  ;;  %v454_v35 = vadd.f32 %v453_v28, %v447_v24 }
  0xfc   : > { %v903_v37 = vpop.f32.mrb[6].mxu0 }
  0xfd   : > { %v455_v36 = vadd.f32 %v454_v35, %v448_v34  ;;  %v917_v38 = vpop.f32.mrb[6].mxu1  ;;  %v330_v40 = vpop.f32.mrb[7].mxu0 }
  0xfe   : > { %v451_v39 = vmul.f32 %v917_v38, %v903_v37  ;;  %v435_v41 = vpop.f32.mrb[7].mxu1 }
  0xff   : > { %v450_v42 = vmul.f32 %v435_v41, %v330_v40  ;;  %v456_v43 = vadd.f32 %v455_v36, %v449_v31 }
 0x100   : > { %v922_v45 = vpop.f32.mrb[8].mxu0 }
 0x101   : > { %v457_v44 = vadd.f32 %v456_v43, %v450_v42  ;;  %v936_v46 = vpop.f32.mrb[8].mxu1  ;;  %v548_v48 = vpop.f32.mrb[9].mxu0 }
 0x102   : > { %v693_v47 = vmul.f32 %v936_v46, %v922_v45  ;;  %v653_v49 = vpop.f32.mrb[9].mxu1 }
 0x103   : > { %v458_v50 = vadd.f32 %v457_v44, %v451_v39  ;;  %v692_v51 = vmul.f32 %v653_v49, %v548_v48 }
 0x104   : > { %v925_v54 = vpop.f32.mrb[10].mxu0 }
 0x105   : > { %v459_v52 = vrot.slane %v458_v50, 4  ;;  %v700_v53 = vadd.f32 %v693_v47, %v692_v51  ;;  %v939_v55 = vpop.f32.mrb[10].mxu1  ;;  %v558_v57 = vpop.f32.mrb[11].mxu0 }
 0x106   : > { %v695_v56 = vmul.f32 %v939_v55, %v925_v54  ;;  %v663_v58 = vpop.f32.mrb[11].mxu1 }
 0x107   : > { %v460_v59 = vadd.f32 %v459_v52, %v458_v50  ;;  %v694_v60 = vmul.f32 %v663_v58, %v558_v57 }
 0x108   : > { %v928_v63 = vpop.f32.mrb[12].mxu0 }
 0x109   : > { %v461_v61 = vrot.slane %v460_v59, 2  ;;  %v701_v62 = vadd.f32 %v700_v53, %v694_v60  ;;  %v942_v0 = vpop.f32.mrb[12].mxu1  ;;  %v568_v2 = vpop.f32.mrb[13].mxu0 }
 0x10a   : > { %v697_v1 = vmul.f32 %v942_v0, %v928_v63  ;;  %v673_v3 = vpop.f32.mrb[13].mxu1 }
 0x10b   : > { %v462_v4 = vadd.f32 %v461_v61, %v460_v59  ;;  %v696_v5 = vmul.f32 %v673_v3, %v568_v2  ;;  %v702_v6 = vadd.f32 %v701_v62, %v695_v56 }
 0x10c   : > { %v931_v8 = vpop.f32.mrb[14].mxu0 }
 0x10d   : > { %v703_v7 = vadd.f32 %v702_v6, %v696_v5  ;;  %v945_v9 = vpop.f32.mrb[14].mxu1  ;;  %v463_v10 = vrot.slane %v462_v4, 1  ;;  %v578_v12 = vpop.f32.mrb[15].mxu0 }
 0x10e   : > { %v699_v11 = vmul.f32 %v945_v9, %v931_v8  ;;  %v683_v13 = vpop.f32.mrb[15].mxu1 }
 0x10f   : > { %v698_v14 = vmul.f32 %v683_v13, %v578_v12  ;;  %v704_v15 = vadd.f32 %v703_v7, %v697_v1  ;;  %v464_v16 = vadd.f32 %v463_v10, %v462_v4 }
 0x111   : > { %v705_v17 = vadd.f32 %v704_v15, %v698_v14  ;;  %465 = vst [vmem:[%s174_s5] sm:$0x1] %v464_v16 }
 0x113   : > { %v706_v18 = vadd.f32 %v705_v17, %v699_v11 }
 0x115   : > { %v707_v19 = vrot.slane %v706_v18, 4 }
 0x117   : > { %v708_v20 = vadd.f32 %v707_v19, %v706_v18 }
 0x119   : > { %v709_v21 = vrot.slane %v708_v20, 2 }
 0x11b   : > { %v710_v22 = vadd.f32 %v709_v21, %v708_v20 }
 0x11d   : > { %v711_v23 = vrot.slane %v710_v22, 1 }
 0x11f   : > { %v712_v24 = vadd.f32 %v711_v23, %v710_v22 }
 0x121   : > { %713 = vst [vmem:[%s174_s5 + $0x1] sm:$0x1] %v712_v24 }
 0x122   : > { %999 = shalt.err (!%p996_p3)
}
 0x123   : > { %s1000_s24 = scalar_lea.hbm %s1191_s10, 32  ;;  %s1004_s27 = scalar_lea.hbm %s1238_s3, 256 }
 0x124   : > { %p1001_p4 = scmp.ne.s32.totalorder %s1191_s10, %s1000_s24  ;;  %p1005_p9 = scmp.lt.u32.totalorder %s1191_s10, %s1238_s3 }
 0x125   : > { %p1006_p10 = scmp.lt.u32.totalorder %s1004_s27, %s1000_s24  ;;  %p1008_p12 = scmp.lt.u32.totalorder %s1000_s24, %s1191_s10 }
 0x126   : > { %p1002_p7 = pnand %p1001_p4, %p1110_p5 }
 0x127   : > { %p1007_p11 = por %p1006_p10, %p1005_p9 }
 0x128   : > { %p1003_p8 = pneg %p1002_p7 }
 0x129   : > { %p1009_p13 = por %p1008_p12, %p1007_p11 }
 0x12b   : > { %p1010_p0 = pnand %p1009_p13, %p1003_p8 }
 0x12d   : > { %1013 = shalt.err (!%p1010_p0)
}
 0x12e   : > { %946 = dma.vmem_to_hbm [thread:$0]  (%p1110_p5), %s1193_s7, 32, %s1191_s10, %s715_s11  }
 0x12f PF: > { %p952_p1 = scmp.ge.s32.totalorder %s1048_s15, 2  ;;  %s740_s30 = sand.u32 1, %s1036_s12  }
 0x130   : > { %s741_s4 = scalar_lea.sflag [#allocation3], %s740_s30 }
 0x131   : > { %p949_p2 = pnand %p952_p1, %p1114_p6 }
 0x133   : > { %1031 = dma.done.wait (!%p949_p2), %s741_s4, 32  }
 0x134   : > { %1033 = vsyncadd (!%p949_p2), %s741_s4, 4294967264  ;;  %p13_p3 = scmp.ge.s32.totalorder %s1097_s18, 10   ;;  %s1241_s12 = smov %s1040_s13 }
 0x135   : > { %s1242_s13 = smov %s1044_s14  ;;  %s1243_s14 = smov %s1108_s21 }
 0x136   : > { %s1244_s15 = smov %s1097_s18  ;;  %15 = sbr.rel (!%p13_p3) target bundleno = 3 (0x3), region = 70 }
 0x13d   :  { %746 = vsyncpa [#allocation3], 1 }
 0x13e   :  { %748 = vsyncpa [#allocation3 + $0x1], 1 }

</bundles_post_ra>
